<compile_context>
chip_gen: v6e
topology: v6e:2x2x1
jax: 0.10.0
libtpu: 0.0.40
codegen_flags: <defaults>
</compile_context>

<pallas_src>
import jax
import jax.numpy as jnp
from jax import lax
from jax.experimental import pallas as pl
from jax.experimental.pallas import tpu as pltpu


def mlp_softmax_kernel(p1_ref, p2_ref, xT_ref, outT_ref):
    # p1_ref : (H, F+1)  columns 0..F-1 = W1^T (H, F), column F = b1
    # p2_ref : (H+1, O)  rows 0..H-1   = W2   (H, O), row H     = b2
    # xT_ref : (F, TB)   input tile, batch on the lane axis
    # outT_ref: (O, TB)  softmax probabilities, batch on the lane axis
    H, f_plus_1 = p1_ref.shape
    F = f_plus_1 - 1
    O = outT_ref.shape[0]

    xT = xT_ref[...]                                    # (F, TB)

    # ---- Layer 1 on the VPU: K = F is tiny, avoid the padded-K MXU trip ----
    acc = p1_ref[:, F:F + 1]                            # (H, 1) bias column
    for f in range(F):                                  # static unroll (F == 2)
        acc = acc + p1_ref[:, f:f + 1] * xT[f:f + 1, :]  # broadcast FMA
    hT = jnp.maximum(acc, 0.0)                          # (H, TB) ReLU

    w2 = p2_ref[:H, :]                                  # (H, O)
    b2 = p2_ref[H:H + 1, :]                             # (1, O)

    if O == 2:
        # 2-class softmax == sigmoid of the logit difference (EUP); no XLU
        # max/sum reductions, no divide, only one tiny cross-sublane reduce.
        dw = w2[:, 1:2] - w2[:, 0:1]                    # (H, 1)
        db = b2[:, 1:2] - b2[:, 0:1]                    # (1, 1)
        d = jnp.sum(dw * hT, axis=0, keepdims=True) + db   # (1, TB) = l1 - l0
        p_one = jax.nn.sigmoid(d)                       # (1, TB)
        p_zero = jax.nn.sigmoid(-d)                     # (1, TB)
        outT_ref[...] = jnp.concatenate([p_zero, p_one], axis=0)  # (2, TB)
    else:
        # General path: MXU matmul + numerically stable softmax over classes.
        logitsT = lax.dot_general(
            w2, hT, dimension_numbers=(((0,), (0,)), ((), ())),
            preferred_element_type=jnp.float32) + jnp.transpose(b2)  # (O, TB)
        m = jnp.max(logitsT, axis=0, keepdims=True)
        e = jnp.exp(logitsT - m)
        outT_ref[...] = e * pl.reciprocal(
            jnp.sum(e, axis=0, keepdims=True), approx=True)


def net_forward(x, w1, b1, w2, b2, *, block_b=128):
    """Forward pass of Net. x:(B,F), w1:(F,H), b1:(1,H), w2:(H,O), b2:(1,O)."""
    B, F = x.shape
    H = w1.shape[1]
    O = w2.shape[1]

    # Layout plumbing in the wrapper: pack params (5 DMAs -> 2) and present x
    # with batch on the lane axis so the kernel output is lane-dense.
    p1 = jnp.concatenate([w1.T, b1.reshape(1, H).T], axis=1)   # (H, F+1)
    p2 = jnp.concatenate([w2, b2.reshape(1, O)], axis=0)       # (H+1, O)
    xT = x.T                                                   # (F, B)

    # Batch tile: 128-lane multiples when B divides evenly, else one block.
    tb = block_b if (B % block_b == 0 and B >= block_b) else B
    nb = B // tb

    cost = pl.CostEstimate(
        flops=2 * B * H * (F + O) + B * H,
        transcendentals=(2 * B) if O == 2 else (B * O),
        bytes_accessed=4 * (B * F + B * O + H * (F + 1) + (H + 1) * O),
    )

    outT = pl.pallas_call(
        mlp_softmax_kernel,
        out_shape=jax.ShapeDtypeStruct((O, B), jnp.float32),
        grid=(nb,),
        in_specs=[
            pl.BlockSpec((H, F + 1), lambda i: (0, 0)),   # params: VMEM-resident
            pl.BlockSpec((H + 1, O), lambda i: (0, 0)),   # params: VMEM-resident
            pl.BlockSpec((F, tb), lambda i: (0, i)),      # x tile over batch
        ],
        out_specs=pl.BlockSpec((O, tb), lambda i: (0, i)),
        compiler_params=pltpu.CompilerParams(
            dimension_semantics=("parallel",)),           # 2 TCs on v7x
        cost_estimate=cost,
    )(p1, p2, xT)

    return outT.T                                         # back to (B, O)


def init_params(key, n_feature, n_hidden, n_output):
    # Mimics PyTorch Linear default init: uniform(-1/sqrt(fan_in), 1/sqrt(fan_in))
    k1, k2, k3, k4 = jax.random.split(key, 4)
    lim1 = 1.0 / jnp.sqrt(jnp.float32(n_feature))
    lim2 = 1.0 / jnp.sqrt(jnp.float32(n_hidden))
    w1 = jax.random.uniform(k1, (n_feature, n_hidden), jnp.float32, -lim1, lim1)
    b1 = jax.random.uniform(k2, (1, n_hidden), jnp.float32, -lim1, lim1)
    w2 = jax.random.uniform(k3, (n_hidden, n_output), jnp.float32, -lim2, lim2)
    b2 = jax.random.uniform(k4, (1, n_output), jnp.float32, -lim2, lim2)
    return w1, b1, w2, b2


if __name__ == "__main__":
    # Net(n_feature=2, n_hidden=32, n_output=2); B=256 (two Gaussian clusters,
    # mirroring torch.normal(+/-2, 1) in the original script). block_b=128 so
    # the batch grid has 2 steps and actually exercises the pipeline.
    B, F_IN, H, O = 256, 2, 32, 2

    key = jax.random.PRNGKey(0)
    kx, kp = jax.random.split(key)

    x = jax.random.normal(kx, (B, F_IN), jnp.float32) + jnp.where(
        (jnp.arange(B) < B // 2)[:, None], 2.0, -2.0
    )
    w1, b1, w2, b2 = init_params(kp, F_IN, H, O)

    y = net_forward(x, w1, b1, w2, b2, block_b=128)
    y = jax.block_until_ready(y)

    # Pure-JAX reference
    h_ref = jnp.maximum(x @ w1 + b1, 0.0)
    y_ref = jax.nn.softmax(h_ref @ w2 + b2, axis=-1)

    assert y.shape == (B, O)
    assert jnp.allclose(y, y_ref, atol=1e-5, rtol=1e-5)
    assert jnp.allclose(jnp.sum(y, axis=-1), 1.0, atol=1e-5)

    print("KERNEL_OK")
</pallas_src>

<mosaic_0001>
module attributes {stable_mosaic.version = 11 : i64} {
  func.func @mlp_softmax_kernel(%arg0: i32, %arg1: memref<32x3xf32, #tpu.memory_space<vmem>>, %arg2: memref<33x2xf32, #tpu.memory_space<vmem>>, %arg3: memref<2x128xf32, #tpu.memory_space<vmem>>, %arg4: memref<2x128xf32, #tpu.memory_space<vmem>>) attributes {dimension_semantics = [#tpu.dimension_semantics<parallel>], iteration_bounds = array<i64: 2>, scalar_prefetch = 0 : i64, scratch_operands = 0 : i64, tpu.core_type = #tpu.core_type<tc>, window_params = [{pipeline_mode = #tpu.pipeline_mode<synchronous>, transform_indices = @transform_0, window_bounds = array<i64: 32, 3>}, {pipeline_mode = #tpu.pipeline_mode<synchronous>, transform_indices = @transform_1, window_bounds = array<i64: 33, 2>}, {transform_indices = @transform_2, window_bounds = array<i64: 2, 128>}, {transform_indices = @transform_3, window_bounds = array<i64: 2, 128>}]} {
    %c0 = arith.constant 0 : index
    %c0_0 = arith.constant 0 : index
    %0 = vector.load %arg3[%c0, %c0_0] : memref<2x128xf32, #tpu.memory_space<vmem>>, vector<2x128xf32>
    %c0_1 = arith.constant 0 : index
    %c2 = arith.constant 2 : index
    %1 = vector.load %arg1[%c0_1, %c2] : memref<32x3xf32, #tpu.memory_space<vmem>>, vector<32x1xf32>
    %c0_2 = arith.constant 0 : index
    %c0_3 = arith.constant 0 : index
    %2 = vector.load %arg1[%c0_2, %c0_3] : memref<32x3xf32, #tpu.memory_space<vmem>>, vector<32x1xf32>
    %3 = vector.extract_strided_slice %0 {offsets = [0, 0], sizes = [1, 128], strides = [1, 1]} : vector<2x128xf32> to vector<1x128xf32>
    %4 = vector.broadcast %2 : vector<32x1xf32> to vector<32x128xf32>
    %5 = vector.broadcast %3 : vector<1x128xf32> to vector<32x128xf32>
    %6 = arith.mulf %4, %5 : vector<32x128xf32>
    %7 = vector.broadcast %1 : vector<32x1xf32> to vector<32x128xf32>
    %8 = arith.addf %7, %6 : vector<32x128xf32>
    %c0_4 = arith.constant 0 : index
    %c1 = arith.constant 1 : index
    %9 = vector.load %arg1[%c0_4, %c1] : memref<32x3xf32, #tpu.memory_space<vmem>>, vector<32x1xf32>
    %10 = vector.extract_strided_slice %0 {offsets = [1, 0], sizes = [1, 128], strides = [1, 1]} : vector<2x128xf32> to vector<1x128xf32>
    %11 = vector.broadcast %9 : vector<32x1xf32> to vector<32x128xf32>
    %12 = vector.broadcast %10 : vector<1x128xf32> to vector<32x128xf32>
    %13 = arith.mulf %11, %12 : vector<32x128xf32>
    %14 = arith.addf %8, %13 : vector<32x128xf32>
    %cst = arith.constant 0.000000e+00 : f32
    %15 = vector.broadcast %cst : f32 to vector<32x128xf32>
    %16 = arith.maximumf %14, %15 : vector<32x128xf32>
    %c0_5 = arith.constant 0 : index
    %c0_6 = arith.constant 0 : index
    %17 = vector.load %arg2[%c0_5, %c0_6] : memref<33x2xf32, #tpu.memory_space<vmem>>, vector<32x2xf32>
    %c32 = arith.constant 32 : index
    %c0_7 = arith.constant 0 : index
    %18 = vector.load %arg2[%c32, %c0_7] : memref<33x2xf32, #tpu.memory_space<vmem>>, vector<1x2xf32>
    %19 = vector.extract_strided_slice %17 {offsets = [0, 1], sizes = [32, 1], strides = [1, 1]} : vector<32x2xf32> to vector<32x1xf32>
    %20 = vector.extract_strided_slice %17 {offsets = [0, 0], sizes = [32, 1], strides = [1, 1]} : vector<32x2xf32> to vector<32x1xf32>
    %21 = arith.subf %19, %20 : vector<32x1xf32>
    %22 = vector.extract_strided_slice %18 {offsets = [0, 1], sizes = [1, 1], strides = [1, 1]} : vector<1x2xf32> to vector<1x1xf32>
    %23 = vector.extract_strided_slice %18 {offsets = [0, 0], sizes = [1, 1], strides = [1, 1]} : vector<1x2xf32> to vector<1x1xf32>
    %24 = arith.subf %22, %23 : vector<1x1xf32>
    %25 = vector.broadcast %21 : vector<32x1xf32> to vector<32x128xf32>
    %26 = arith.mulf %25, %16 : vector<32x128xf32>
    %cst_8 = arith.constant dense<0.000000e+00> : vector<128xf32>
    %27 = vector.multi_reduction <add>, %26, %cst_8 [0] : vector<32x128xf32> to vector<128xf32>
    %28 = vector.shape_cast %27 : vector<128xf32> to vector<1x128xf32>
    %29 = vector.broadcast %24 : vector<1x1xf32> to vector<1x128xf32>
    %30 = arith.addf %28, %29 : vector<1x128xf32>
    %31 = arith.negf %30 : vector<1x128xf32>
    %32 = math.exp %31 : vector<1x128xf32>
    %cst_9 = arith.constant 1.000000e+00 : f32
    %33 = vector.broadcast %cst_9 : f32 to vector<1x128xf32>
    %34 = arith.addf %33, %32 : vector<1x128xf32>
    %35 = arith.divf %33, %34 : vector<1x128xf32>
    %cst_10 = arith.constant 0.000000e+00 : f32
    %36 = vector.broadcast %cst_10 : f32 to vector<1x128xf32>
    %37 = arith.subf %36, %30 : vector<1x128xf32>
    %38 = arith.negf %37 : vector<1x128xf32>
    %39 = math.exp %38 : vector<1x128xf32>
    %cst_11 = arith.constant 1.000000e+00 : f32
    %40 = vector.broadcast %cst_11 : f32 to vector<1x128xf32>
    %41 = arith.addf %40, %39 : vector<1x128xf32>
    %42 = arith.divf %40, %41 : vector<1x128xf32>
    %43 = tpu.concatenate %42, %35 in 0 : vector<1x128xf32>, vector<1x128xf32> -> vector<2x128xf32>
    %c0_12 = arith.constant 0 : index
    %c0_13 = arith.constant 0 : index
    %44 = vector.load %arg4[%c0_12, %c0_13] : memref<2x128xf32, #tpu.memory_space<vmem>>, vector<2x128xf32>
    tpu.vector_store %arg4[%c0_12, %c0_13], %43 {strides = array<i32>} : memref<2x128xf32, #tpu.memory_space<vmem>>, vector<2x128xf32>,
    return
  }
  func.func @transform_0(%arg0: i32) -> (i32, i32) {
    %c0_i32 = arith.constant 0 : i32
    %c0_i32_0 = arith.constant 0 : i32
    %c0_i32_1 = arith.constant 0 : i32
    return %c0_i32, %c0_i32_0 : i32, i32
  }
  func.func @transform_1(%arg0: i32) -> (i32, i32) {
    %c0_i32 = arith.constant 0 : i32
    %c0_i32_0 = arith.constant 0 : i32
    %c0_i32_1 = arith.constant 0 : i32
    return %c0_i32, %c0_i32_0 : i32, i32
  }
  func.func @transform_2(%arg0: i32) -> (i32, i32) {
    %c0_i32 = arith.constant 0 : i32
    %c0_i32_0 = arith.constant 0 : i32
    return %c0_i32, %arg0 : i32, i32
  }
  func.func @transform_3(%arg0: i32) -> (i32, i32) {
    %c0_i32 = arith.constant 0 : i32
    %c0_i32_0 = arith.constant 0 : i32
    return %c0_i32, %arg0 : i32, i32
  }
}

</mosaic_0001>

<bundles_post_ra>
// kernel: tpu_custom_call.1
= control target key start
LH: loop header
LB: loop body
LE: loop exit
PB: predicated region body
PF: predicated region fallthrough
CT: control target
= control target key end

     0   :  { %8 = vsyncpa [#allocation3], 0  ;;  %s690_s0 = inlined_call_operand.vmem [shape: f32[32,3], index: 0, kind: input, shape index: {}]   ;;  %s691_s1 = inlined_call_operand.vmem [shape: f32[33,2], index: 1, kind: input, shape index: {}]   ;;  %s692_s2 = inlined_call_operand.vmem [shape: f32[2,256], index: 2, kind: input, shape index: {}]   ;;  %s693_s3 = inlined_call_operand.hbm [shape: f32[2,256], index: 3, kind: output, shape index: {}]  }
   0x1   :  { %10 = vsyncpa [#allocation3 + $0x1], 0  ;;  %s570_s12 = smov 0   ;;  %s572_s13 = smov 0  }
   0x2   :  { %s574_s14 = smov 0   ;;  %s576_s15 = smov 0  }
   0x3 LB: > { %s591_s16 = sadd.s32 4294967295, %s543_s15   ;;  %s412_s17 = sadd.s32 4294967294, %s543_s15   ;;  %s543_s15 = sphi %s576_s15, %s699_s15   ;;  %s539_s14 = sphi %s574_s14, %s698_s14   ;;  %s535_s13 = sphi %s572_s13, %s697_s13   ;;  %s531_s12 = sphi %s570_s12, %s696_s12  }
   0x4   : > { %s595_s18 = sadd.s32 1, %s543_s15   ;;  %s91_s19 = sadd.s32 1, %s539_s14 }
   0x5   : > { %s88_s20 = ssub.s32 %s543_s15, %s595_s18  ;;  %p101_p0 = scmp.ne.s32.totalorder %s539_s14, %s535_s13 }
   0x6   : > { %p89_p1 = scmp.eq.s32.totalorder %s88_s20, 0  ;;  %p102_p2 = scmp.eq.s32.totalorder %s591_s16, 1 }
   0x7   : > { %p107_p3 = scmp.ne.s32.totalorder %s535_s13, %s531_s12  ;;  %p108_p4 = scmp.eq.s32.totalorder %s412_s17, 1 }
   0x8   : > { %s606_s21 = scalar_select %p89_p1, %s539_s14, %s91_s19  }
   0x9   : > { %p608_p5 = por %p102_p2, %p101_p0  ;;  %p612_p6 = por %p108_p4, %p107_p3 }
   0xa   : > { %p415_p7 = scmp.ge.s32.totalorder %s543_s15, 1  ;;  %p139_p8 = scmp.lt.s32.totalorder %s543_s15, 3 }
   0xc   : > { %p140_p9 = pnand %p415_p7, %p139_p8 }
   0xd   : > { %s545_s28 = smov (!%p140_p9), 1   ;;  %p162_p10 = scmp.lt.s32.totalorder (!%p140_p9), %s591_s16, 1 }
   0xe   : > { %143 = sbr.rel (%p140_p9) target bundleno = 335 (0x14f), region = 32  ;;  %s159_s30 = sand.u32 (!%p140_p9), 1, %s535_s13  }
   0xf   : > { %s416_s4 = sshll.u32 (!%p140_p9), %s159_s30, 1  ;;  %s421_s5 = sshll.u32 (!%p140_p9), %s591_s16, 5 }
  0x10   : > { %s161_s6 = scalar_lea.vmem (!%p140_p9), [#allocation2], %s416_s4  ;;  %s655_s10 = scalar_lea.hbm (!%p140_p9), %s693_s3, %s421_s5 }
  0x11   : > { %s353_s7 = sshll.u32 (!%p140_p9), %s161_s6, 4  ;;  %s340_s11 = scalar_lea.sflag (!%p140_p9), [#allocation3], %s159_s30  ;;  %s354_s7 = int_to_ptr.vmem [resolvable:$true] %s353_s7 }
  0x12   : > { %s483_s17 = scalar_lea.vmem (!%p140_p9), %s354_s7, 32 }
  0x13   : > { %v251_v0 = vld [vmem:[%s691_s1] sm:$0xff]  ;;  %v253_v1 = vld [vmem:[%s691_s1 + $0x10] sm:$0xff]  ;;  %v252_v2 = vld [vmem:[%s691_s1 + $0x8] sm:$0xff]  ;;  %v546_v4 = vmov 0   ;;  %v547_v10 = vmov 2   ;;  %v548_v11 = vmov 1   ;;  %v191_v26 = vlaneseq  ;;  %p484_p11 = scmp.ne.s32.totalorder %s354_s7, %s483_s17 }
  0x14   : > { %260 = vrot.lane.b32.xlu0 %v251_v0, %s545_s28  ;;  %264 = vrot.lane.b32.xlu1 %v253_v1, %s545_s28  ;;  %v254_v3 = vld [vmem:[%s691_s1 + $0x18] sm:$0xff]  ;;  %v255_v5 = vld [vmem:[%s691_s1 + $0x20] sm:$0x1]  ;;  %s163_s25 = scalar_select %p162_p10, %s591_s16, 1  ;;  %vm336_vm0 = vcmask 1040384  }
  0x15   : > { %467 = vset.pattern.permute.xlu1 %v546_v4  ;;  %468 = vset.pattern.permute.xlu0 %v546_v4  ;;  %v167_v6 = vld [vmem:[%s690_s0] sm:$0xff]  ;;  %v169_v7 = vld [vmem:[%s690_s0 + $0x10] sm:$0xff]  ;;  %v168_v8 = vld [vmem:[%s690_s0 + $0x8] sm:$0xff]  ;;  %v192_v27 = vshrl.u32 %v191_v26, 7  ;;  %p485_p12 = pnand %p484_p11, %p608_p5  ;;  %s549_s16 = smov [#allocation2]  }
  0x16   : > { %v170_v9 = vld [vmem:[%s690_s0 + $0x18] sm:$0xff]  ;;  %s417_s26 = sshll.u32 %s163_s25, 1  ;;  %s487_s19 = sshll.u32 %s549_s16, 4  ;;  %s488_s19 = int_to_ptr.vmem [resolvable:$false] %s487_s19 }
  0x17   : > { %s165_s29 = scalar_lea.vmem %s692_s2, %s417_s26  ;;  %v193_v30 = vsub.s32 0, %v192_v27  ;;  %v237_v35 = vsub.s32 1, %v192_v27  ;;  %p486_p13 = pneg %p485_p12 }
  0x18   : > { %262 = vrot.lane.b32.xlu0 %v252_v2, %s545_s28  ;;  %266 = vrot.lane.b32.xlu1 %v254_v3, %s545_s28  ;;  %v166_v31 = vld [vmem:[%s165_s29] sm:$0x3]  ;;  %s489_s20 = scalar_lea.vmem %s488_s19, 64  ;;  %p490_p0 = scmp.lt.s32.totalorder %s354_s7, %s488_s19 }
  0x19   : > { %v194_v34 = vrot.slane %v166_v31, %v193_v30  ;;  %v238_v37 = vrot.slane %v166_v31, %v237_v35  ;;  %p491_p1 = scmp.lt.s32.totalorder %s489_s20, %s483_s17 }
  0x1b   : > { %p492_p2 = por %p491_p1, %p490_p0 }
  0x1c   : > { %277 = vrot.lane.b32.xlu0 %v255_v5, %s545_s28  ;;  %173 = vperm.xlu1 %467, %v167_v6  }
  0x1d   : > { %p493_p3 = pnand %p492_p2, %p486_p13 }
  0x20   : > { %183 = vperm.xlu1 %467, %v169_v7   ;;  %178 = vperm.xlu0 %468, %v168_v8  }
  0x24   : > { %469 = vset.pattern.permute.xlu1 %v547_v10  ;;  %188 = vperm.xlu0 %468, %v170_v9  }
  0x25   : > { %200 = vperm.xlu1 %469, %v167_v6  }
  0x28   : > { %471 = vset.pattern.permute.xlu0 %v547_v10 }
  0x29   : > { %470 = vset.pattern.permute.xlu1 %v548_v11  ;;  %204 = vperm.xlu0 %471, %v168_v8  }
  0x2a   : > { %220 = vperm.xlu1 %470, %v167_v6  }
  0x2d   : > { %212 = vperm.xlu0 %471, %v170_v9  }
  0x2e   : > { %224 = vperm.xlu1 %470, %v168_v8  }
  0x31   : > { %474 = vset.pattern.permute.xlu0 %v548_v11 }
  0x32   : > { %472 = vset.pattern.permute.xlu1 %v547_v10 }
  0x33   : > { %208 = vperm.xlu1 %472, %v169_v7  }
  0x37   : > { %473 = vset.pattern.permute.xlu1 %v548_v11 }
  0x38   : > { %228 = vperm.xlu1 %473, %v169_v7  }
  0x3c   : > { %232 = vperm.xlu1 %473, %v170_v9  }
  0x86   : > { %v261_v12 = vpop.permute.xlu0 %260  ;;  %v265_v13 = vpop.permute.xlu1 %264 }
  0x87   : > { %v272_v14 = vsub.f32 %v251_v0, %v261_v12  ;;  %v274_v15 = vsub.f32 %v253_v1, %v265_v13 }
  0x89   : > { %283 = vperm.xlu1 %473, %v272_v14  }
  0x8a   : > { %v263_v16 = vpop.permute.xlu0 %262  ;;  %v267_v17 = vpop.permute.xlu1 %266 }
  0x8b   : > { %v273_v18 = vsub.f32 %v252_v2, %v263_v16  ;;  %v275_v19 = vsub.f32 %v254_v3, %v267_v17 }
  0x8d   : > { %288 = vperm.xlu0 %474, %v273_v18   ;;  %293 = vperm.xlu1 %473, %v274_v15  }
  0x8e   : > { %v278_v20 = vpop.permute.xlu0 %277 }
  0x8f   : > { %v280_v21 = vsub.f32 %v255_v5, %v278_v20 }
  0x91   : > { %316 = vperm.xlu0 %474, %v280_v21   ;;  %298 = vperm.xlu1 %473, %v275_v19  }
  0x97   : > { %v174_v22 = vpop.permute.xlu1 %173 }
  0x98   : > { %v195_v36 = vmul.f32 %v194_v34, %v174_v22 }
  0x9b   : > { %v184_v23 = vpop.permute.xlu1 %183  ;;  %v179_v29 = vpop.permute.xlu0 %178 }
  0x9c   : > { %v196_v38 = vmul.f32 %v194_v34, %v179_v29  ;;  %v197_v41 = vmul.f32 %v194_v34, %v184_v23 }
  0x9f   : > { %v189_v33 = vpop.permute.xlu0 %188 }
  0xa0   : > { %v201_v24 = vpop.permute.xlu1 %200  ;;  %v198_v42 = vmul.f32 %v194_v34, %v189_v33 }
  0xa1   : > { %v215_v43 = vadd.f32 %v201_v24, %v195_v36 }
  0xa4   : > { %v205_v40 = vpop.permute.xlu0 %204 }
  0xa5   : > { %v221_v25 = vpop.permute.xlu1 %220  ;;  %v216_v46 = vadd.f32 %v205_v40, %v196_v38 }
  0xa6   : > { %v239_v44 = vmul.f32 %v238_v37, %v221_v25 }
  0xa8   : > { %v213_v47 = vpop.permute.xlu0 %212  ;;  %v243_v51 = vadd.f32 %v239_v44, %v215_v43 }
  0xa9   : > { %v225_v28 = vpop.permute.xlu1 %224  ;;  %v218_v53 = vadd.f32 %v213_v47, %v198_v42 }
  0xaa   : > { %v240_v45 = vmul.f32 %v238_v37, %v225_v28  ;;  %v247_v58 = vmax.f32 %v243_v51, 0.0 }
  0xac   : > { %v244_v52 = vadd.f32 %v240_v45, %v216_v46 }
  0xae   : > { %v209_v32 = vpop.permute.xlu1 %208  ;;  %v248_v59 = vmax.f32 %v244_v52, 0.0 }
  0xaf   : > { %v217_v49 = vadd.f32 %v209_v32, %v197_v41 }
  0xb3   : > { %v229_v39 = vpop.permute.xlu1 %228 }
  0xb4   : > { %v241_v50 = vmul.f32 %v238_v37, %v229_v39 }
  0xb6   : > { %v245_v56 = vadd.f32 %v241_v50, %v217_v49 }
  0xb7   : > { %v233_v48 = vpop.permute.xlu1 %232 }
  0xb8   : > { %v242_v54 = vmul.f32 %v238_v37, %v233_v48  ;;  %v249_v0 = vmax.f32 %v245_v56, 0.0 }
  0xba   : > { %v246_v57 = vadd.f32 %v242_v54, %v218_v53 }
  0xbc   : > { %v250_v3 = vmax.f32 %v246_v57, 0.0 }
 0x104   : > { %v284_v55 = vpop.permute.xlu1 %283 }
 0x105   : > { %v301_v62 = vmul.f32 %v284_v55, %v247_v58 }
 0x108   : > { %v289_v60 = vpop.permute.xlu0 %288  ;;  %v294_v61 = vpop.permute.xlu1 %293 }
 0x109   : > { %v302_v63 = vmul.f32 %v289_v60, %v248_v59  ;;  %v303_v2 = vmul.f32 %v294_v61, %v249_v0 }
 0x10b   : > { %v305_v1 = vadd.f32 %v302_v63, %v301_v62 }
 0x10c   : > { %v299_v4 = vpop.permute.xlu1 %298  ;;  %v317_v14 = vpop.permute.xlu0 %316 }
 0x10d   : > { %v306_v5 = vadd.f32 %v305_v1, %v303_v2  ;;  %v304_v6 = vmul.f32 %v299_v4, %v250_v3 }
 0x10f   : > { %v307_v7 = vadd.f32 %v306_v5, %v304_v6 }
 0x111   : > { %v308_v8 = vrot.slane %v307_v7, 4 }
 0x113   : > { %v309_v9 = vadd.f32 %v308_v8, %v307_v7 }
 0x115   : > { %v310_v10 = vrot.slane %v309_v9, 2 }
 0x117   : > { %v311_v11 = vadd.f32 %v310_v10, %v309_v9 }
 0x119   : > { %v312_v12 = vrot.slane %v311_v11, 1 }
 0x11b   : > { %v313_v13 = vadd.f32 %v312_v12, %v311_v11 }
 0x11d   : > { %v319_v15 = vadd.f32 %v317_v14, %v313_v13 }
 0x11f   : > { %v418_v16 = vmul.f32 -1.442695, %v319_v15  ;;  %v326_v17 = vsub.f32 0.0, %v319_v15 }
 0x121   : > { %475 = vpow2.f32 %v418_v16  ;;  %v419_v18 = vmul.f32 -1.442695, %v326_v17 }
 0x123   : > { %477 = vpow2.f32 %v419_v18 }
 0x12e   : > { %v476_v19 = vpop.eup %475 }
 0x12f   : > { %v323_v20 = vadd.f32 1.0, %v476_v19 }
 0x130   : > { %v478_v21 = vpop.eup %477 }
 0x131   : > { %v330_v22 = vadd.f32 1.0, %v478_v21  ;;  %479 = vrcp.f32 %v323_v20 }
 0x133   : > { %481 = vrcp.f32 %v330_v22 }
 0x13e   : > { %v480_v23 = vpop.eup %479 }
 0x13f   : > { %v334_v24 = vrot.slane %v480_v23, 7 }
 0x140   : > { %v482_v25 = vpop.eup %481 }
 0x141   : > { %v337_v26 = vsel %vm336_vm0, %v482_v25, %v334_v24 }
 0x142   : > { %338 = vst [vmem:[%s161_s6] sm:$0x3] %v337_v26 }
 0x143   : > { %496 = shalt.err (!%p493_p3)
}
 0x144   : > { %s497_s24 = scalar_lea.hbm %s655_s10, 32  ;;  %s501_s27 = scalar_lea.hbm %s693_s3, 64 }
 0x145   : > { %p498_p4 = scmp.ne.s32.totalorder %s655_s10, %s497_s24  ;;  %p502_p9 = scmp.lt.s32.totalorder %s655_s10, %s693_s3 }
 0x146   : > { %p503_p10 = scmp.lt.s32.totalorder %s501_s27, %s497_s24 }
 0x147   : > { %p499_p7 = pnand %p498_p4, %p608_p5 }
 0x148   : > { %p504_p11 = por %p503_p10, %p502_p9 }
 0x149   : > { %p500_p8 = pneg %p499_p7 }
 0x14b   : > { %p505_p12 = pnand %p504_p11, %p500_p8 }
 0x14d   : > { %508 = shalt.err (!%p505_p12)
}
 0x14e   : > { %424 = dma.vmem_to_hbm [thread:$0]  (%p608_p5), %s354_s7, 32, %s655_s10, %s340_s11  }
 0x14f PF: > { %p430_p13 = scmp.ge.s32.totalorder %s543_s15, 2  ;;  %s365_s30 = sand.u32 1, %s531_s12  }
 0x150   : > { %s366_s4 = scalar_lea.sflag [#allocation3], %s365_s30 }
 0x151   : > { %p427_p0 = pnand %p430_p13, %p612_p6 }
 0x153   : > { %p428_p1 = pneg %p427_p0 }
 0x155   : > { %526 = dma.done.wait (%p428_p1), %s366_s4, 32  }
 0x156   : > { %528 = vsyncadd (%p428_p1), %s366_s4, 4294967264  ;;  %p13_p2 = scmp.ge.s32.totalorder %s595_s18, 4   ;;  %s696_s12 = smov %s535_s13 }
 0x157   : > { %s697_s13 = smov %s539_s14  ;;  %s698_s14 = smov %s606_s21 }
 0x158   : > { %s699_s15 = smov %s595_s18  ;;  %15 = sbr.rel (!%p13_p2) target bundleno = 3 (0x3), region = 67 }
 0x15d   :  { %371 = vsyncpa [#allocation3], 1 }
 0x15e   :  { %373 = vsyncpa [#allocation3 + $0x1], 1 }

</bundles_post_ra>
